<compile_context>
chip_gen: v6e
topology: v6e:2x2x1
jax: 0.10.0
libtpu: 0.0.40
codegen_flags: <defaults>
</compile_context>

<pallas_src>
import jax
import jax.numpy as jnp
from jax.experimental import pallas as pl
from jax.experimental.pallas import tpu as pltpu


def _pick_rows_per_tile(N, H, W, C, itemsize, stream_budget_bytes,
                        max_unroll=64, max_ts_cap=2048):
    """Input-image rows processed per grid step.

    ts = tr*W must be a multiple of 128 (lane alignment of the BlockSpecs)
    unless tr == H (full-extent blocks are always legal), and the
    double-buffered x/r/out streams must fit the per-generation VMEM budget.
    """
    # bytes per input-spatial element for the double-buffered x, r, out streams
    per_elem = 2 * (C + (C // 2) * 4 + C * 4) * itemsize
    target = min(max(128, stream_budget_bytes // per_elem), max_ts_cap)

    divisors = [d for d in range(1, H + 1) if H % d == 0]
    aligned = [d for d in divisors if (d * W) % 128 == 0]
    if not aligned:
        # No row count gives a 128-multiple lane width; fall back to whole image
        # per grid step (legal full-extent blocks, no giant dup matrix anymore).
        # TODO(synk): pad W to a multiple of 128 in the wrapper for such shapes.
        return H
    small = [d for d in aligned if d <= max_unroll]
    cands = small if small else [min(aligned)]
    fitting = [d for d in cands if d * W <= target]
    if not fitting:
        return min(cands)
    if N == 1:
        # v7x has 2 TensorCores: keep >= 2 parallel grid points when possible.
        multi = [d for d in fitting if H // d >= 2]
        if multi:
            return max(multi)
    return max(fitting)


def upsampling_forward(x, r, weight, bias):
    """Equivalent of UpSampling.forward(x, r).

    x:      (N, C, H, W)
    r:      (N, C//2, 2H, 2W)     (same dtype as x, like torch.cat requires)
    weight: (C//2, C)             (Conv2d 1x1 weight, squeezed)
    bias:   (C//2,)
    returns (N, C, 2H, 2W)
    """
    N, C, H, W = x.shape
    Co = C // 2
    assert C % 2 == 0
    assert r.shape == (N, Co, 2 * H, 2 * W)
    assert r.dtype == x.dtype, "torch.cat requires matching dtypes"
    assert weight.shape == (Co, C) and bias.shape == (Co,)

    S = H * W
    itemsize = jnp.dtype(x.dtype).itemsize

    # ---- generation-aware VMEM budget -------------------------------------
    try:
        vmem_cap = int(pltpu.get_tpu_info().vmem_capacity_bytes)
    except Exception:  # pragma: no cover - CPU / older runtimes
        vmem_cap = 128 * 2**20
    if vmem_cap <= 64 * 2**20:        # v7x-class: 64 MiB physical VMEM
        stream_budget = 28 * 2**20    # keep working set small, preserve 2-deep buffers
    else:                             # v5e / v6e-class: 128 MiB physical VMEM
        stream_budget = 80 * 2**20    # bigger tiles -> closer to HBM roofline

    tr = _pick_rows_per_tile(N, H, W, C, itemsize, stream_budget)
    ts = tr * W                        # input spatial elements per tile
    n_tiles = H // tr

    # Free (contiguous, metadata-only) reshapes — no transposes, no pads.
    x_flat = x.reshape(N, C, S)                    # (N, C, S)
    r_flat = r.reshape(N, Co, 4 * S)               # (N, Co, 4S)
    w2 = weight.astype(x.dtype)                    # (Co, C)
    b2 = bias.reshape(Co, 1).astype(jnp.float32)   # (Co, 1)

    # Tiny exact one-hot W-duplication matrix: (row @ D)[:, 2w+b] = row[:, w].
    D = (jnp.arange(2 * W)[None, :] // 2 ==
         jnp.arange(W)[:, None]).astype(jnp.float32)          # (W, 2W)

    def kernel(x_ref, r_ref, w_ref, b_ref, d_ref, o_ref):
        # x_ref: (1, C, ts)   r_ref: (1, Co, 4ts)   w_ref: (Co, C)
        # b_ref: (Co, 1)      d_ref: (W, 2W)        o_ref: (1, C, 4ts)
        # 1x1 conv at original resolution — one MXU matmul per tile.
        z = jnp.dot(w_ref[...], x_ref[0], preferred_element_type=jnp.float32)
        z = z + b_ref[...]                                    # (Co, ts) f32
        d = d_ref[...]
        for t in range(tr):                                   # static unroll over rows
            row = z[:, t * W:(t + 1) * W]                     # (Co, W)
            wd = jnp.dot(row, d, preferred_element_type=jnp.float32)
            wd = wd.astype(o_ref.dtype)                       # (Co, 2W) W-duplicated
            base = t * 4 * W
            # H-duplication = the same conv row stored at both output row offsets.
            o_ref[0, :Co, base:base + 2 * W] = wd             # output row 2t
            o_ref[0, :Co, base + 2 * W:base + 4 * W] = wd     # output row 2t+1
        # torch.cat((conv, r), dim=1): skip connection as one channel-slab copy.
        o_ref[0, Co:, :] = r_ref[0]

    # ---- VMEM accounting (both pipeline buffers of every blocked stream) ---
    stream_bytes = 2 * (C * ts + Co * 4 * ts + C * 4 * ts) * itemsize
    const_bytes = Co * C * itemsize + Co * 4 + W * 2 * W * 4
    needed = stream_bytes + 2 * const_bytes + (2 << 20)       # slack
    vmem_limit = int(min(max(needed, 32 * 2**20),
                         max(vmem_cap - 8 * 2**20, 32 * 2**20)))

    const_mode = pl.Buffered(1)   # grid-invariant operands: single buffer
    out_flat = pl.pallas_call(
        kernel,
        out_shape=jax.ShapeDtypeStruct((N, C, 4 * S), x.dtype),
        grid=(N, n_tiles),
        in_specs=[
            pl.BlockSpec((1, C, ts), lambda n, i: (n, 0, i)),            # activations
            pl.BlockSpec((1, Co, 4 * ts), lambda n, i: (n, 0, i)),       # skip rows
            pl.BlockSpec((Co, C), lambda n, i: (0, 0),
                         pipeline_mode=const_mode),                      # conv weight
            pl.BlockSpec((Co, 1), lambda n, i: (0, 0),
                         pipeline_mode=const_mode),                      # conv bias
            pl.BlockSpec((W, 2 * W), lambda n, i: (0, 0),
                         pipeline_mode=const_mode),                      # W-dup matrix
        ],
        out_specs=pl.BlockSpec((1, C, 4 * ts), lambda n, i: (n, 0, i)),
        compiler_params=pltpu.CompilerParams(
            dimension_semantics=("parallel", "parallel"),
            vmem_limit_bytes=vmem_limit),
    )(x_flat, r_flat, w2, b2, D)

    return out_flat.reshape(N, C, 2 * H, 2 * W)   # free reshape back to NCHW


def _reference(x, r, weight, bias):
    up = jnp.repeat(jnp.repeat(x, 2, axis=2), 2, axis=3)
    conv = jnp.einsum('nchw,oc->nohw', up, weight) + bias[None, :, None, None]
    return jnp.concatenate([conv, r], axis=1)


if __name__ == "__main__":
    key = jax.random.PRNGKey(0)
    N, C, H, W = 2, 4, 16, 16
    Co = C // 2

    kx, kr, kw, kb = jax.random.split(key, 4)
    x = jax.random.normal(kx, (N, C, H, W), dtype=jnp.float32)
    r = jax.random.normal(kr, (N, Co, 2 * H, 2 * W), dtype=jnp.float32)
    # deterministic synthetic Conv2d(C, C//2, 1, 1) parameters
    weight = jax.random.normal(kw, (Co, C), dtype=jnp.float32) * 0.1
    bias = jax.random.normal(kb, (Co,), dtype=jnp.float32) * 0.1

    out = jax.block_until_ready(upsampling_forward(x, r, weight, bias))

    ref = _reference(x, r, weight, bias)
    assert out.shape == (N, C, 2 * H, 2 * W), out.shape
    assert jnp.allclose(out, ref, atol=1e-5, rtol=1e-5), "mismatch vs reference"

    print("KERNEL_OK")
</pallas_src>

<mosaic_0001>
module attributes {stable_mosaic.version = 11 : i64} {
  func.func @kernel(%arg0: i32, %arg1: i32, %arg2: memref<1x4x256xf32, #tpu.memory_space<vmem>>, %arg3: memref<1x2x1024xf32, #tpu.memory_space<vmem>>, %arg4: memref<2x4xf32, #tpu.memory_space<vmem>>, %arg5: memref<2x1xf32, #tpu.memory_space<vmem>>, %arg6: memref<16x32xf32, #tpu.memory_space<vmem>>, %arg7: memref<1x4x1024xf32, #tpu.memory_space<vmem>>) attributes {dimension_semantics = [#tpu.dimension_semantics<parallel>, #tpu.dimension_semantics<parallel>], iteration_bounds = array<i64: 2, 1>, scalar_prefetch = 0 : i64, scratch_operands = 0 : i64, tpu.core_type = #tpu.core_type<tc>, window_params = [{transform_indices = @transform_0, window_bounds = array<i64: 1, 4, 256>}, {transform_indices = @transform_1, window_bounds = array<i64: 1, 2, 1024>}, {pipeline_mode = #tpu.pipeline_mode<synchronous>, transform_indices = @transform_2, window_bounds = array<i64: 2, 4>}, {pipeline_mode = #tpu.pipeline_mode<synchronous>, transform_indices = @transform_3, window_bounds = array<i64: 2, 1>}, {pipeline_mode = #tpu.pipeline_mode<synchronous>, transform_indices = @transform_4, window_bounds = array<i64: 16, 32>}, {transform_indices = @transform_5, window_bounds = array<i64: 1, 4, 1024>}]} {
    %c0 = arith.constant 0 : index
    %c0_0 = arith.constant 0 : index
    %0 = vector.load %arg4[%c0, %c0_0] : memref<2x4xf32, #tpu.memory_space<vmem>>, vector<2x4xf32>
    %c0_1 = arith.constant 0 : index
    %c0_2 = arith.constant 0 : index
    %c0_3 = arith.constant 0 : index
    %1 = vector.load %arg2[%c0_1, %c0_2, %c0_3] : memref<1x4x256xf32, #tpu.memory_space<vmem>>, vector<1x4x256xf32>
    %2 = vector.shape_cast %1 : vector<1x4x256xf32> to vector<4x256xf32>
    %cst = arith.constant dense<0.000000e+00> : vector<2x256xf32>
    %3 = tpu.matmul %0, %2, %cst {dimension_numbers = #tpu.dot_dimension_numbers<[1], [0], [0], [1], [0, 0, 1, 1], [], []>} : vector<2x4xf32>, vector<4x256xf32>, vector<2x256xf32> -> vector<2x256xf32>
    %c0_4 = arith.constant 0 : index
    %c0_5 = arith.constant 0 : index
    %4 = vector.load %arg5[%c0_4, %c0_5] : memref<2x1xf32, #tpu.memory_space<vmem>>, vector<2x1xf32>
    %5 = vector.broadcast %4 : vector<2x1xf32> to vector<2x256xf32>
    %6 = arith.addf %3, %5 : vector<2x256xf32>
    %c0_6 = arith.constant 0 : index
    %c0_7 = arith.constant 0 : index
    %7 = vector.load %arg6[%c0_6, %c0_7] : memref<16x32xf32, #tpu.memory_space<vmem>>, vector<16x32xf32>
    %8 = vector.extract_strided_slice %6 {offsets = [0, 0], sizes = [2, 16], strides = [1, 1]} : vector<2x256xf32> to vector<2x16xf32>
    %cst_8 = arith.constant dense<0.000000e+00> : vector<2x32xf32>
    %9 = tpu.matmul %8, %7, %cst_8 {dimension_numbers = #tpu.dot_dimension_numbers<[1], [0], [0], [1], [0, 0, 1, 1], [], []>} : vector<2x16xf32>, vector<16x32xf32>, vector<2x32xf32> -> vector<2x32xf32>
    %c0_9 = arith.constant 0 : index
    %c0_10 = arith.constant 0 : index
    %c0_11 = arith.constant 0 : index
    %10 = vector.load %arg7[%c0_9, %c0_10, %c0_11] : memref<1x4x1024xf32, #tpu.memory_space<vmem>>, vector<1x2x32xf32>
    %11 = vector.shape_cast %10 : vector<1x2x32xf32> to vector<2x32xf32>
    %12 = vector.shape_cast %9 : vector<2x32xf32> to vector<1x2x32xf32>
    tpu.vector_store %arg7[%c0_9, %c0_10, %c0_11], %12 {strides = array<i32>} : memref<1x4x1024xf32, #tpu.memory_space<vmem>>, vector<1x2x32xf32>,
    %c0_12 = arith.constant 0 : index
    %c0_13 = arith.constant 0 : index
    %c32 = arith.constant 32 : index
    %13 = vector.load %arg7[%c0_12, %c0_13, %c32] : memref<1x4x1024xf32, #tpu.memory_space<vmem>>, vector<1x2x32xf32>
    %14 = vector.shape_cast %13 : vector<1x2x32xf32> to vector<2x32xf32>
    %15 = vector.shape_cast %9 : vector<2x32xf32> to vector<1x2x32xf32>
    tpu.vector_store %arg7[%c0_12, %c0_13, %c32], %15 {strides = array<i32>} : memref<1x4x1024xf32, #tpu.memory_space<vmem>>, vector<1x2x32xf32>,
    %16 = vector.extract_strided_slice %6 {offsets = [0, 16], sizes = [2, 16], strides = [1, 1]} : vector<2x256xf32> to vector<2x16xf32>
    %cst_14 = arith.constant dense<0.000000e+00> : vector<2x32xf32>
    %17 = tpu.matmul %16, %7, %cst_14 {dimension_numbers = #tpu.dot_dimension_numbers<[1], [0], [0], [1], [0, 0, 1, 1], [], []>} : vector<2x16xf32>, vector<16x32xf32>, vector<2x32xf32> -> vector<2x32xf32>
    %c0_15 = arith.constant 0 : index
    %c0_16 = arith.constant 0 : index
    %c64 = arith.constant 64 : index
    %18 = vector.load %arg7[%c0_15, %c0_16, %c64] : memref<1x4x1024xf32, #tpu.memory_space<vmem>>, vector<1x2x32xf32>
    %19 = vector.shape_cast %18 : vector<1x2x32xf32> to vector<2x32xf32>
    %20 = vector.shape_cast %17 : vector<2x32xf32> to vector<1x2x32xf32>
    tpu.vector_store %arg7[%c0_15, %c0_16, %c64], %20 {strides = array<i32>} : memref<1x4x1024xf32, #tpu.memory_space<vmem>>, vector<1x2x32xf32>,
    %c0_17 = arith.constant 0 : index
    %c0_18 = arith.constant 0 : index
    %c96 = arith.constant 96 : index
    %21 = vector.load %arg7[%c0_17, %c0_18, %c96] : memref<1x4x1024xf32, #tpu.memory_space<vmem>>, vector<1x2x32xf32>
    %22 = vector.shape_cast %21 : vector<1x2x32xf32> to vector<2x32xf32>
    %23 = vector.shape_cast %17 : vector<2x32xf32> to vector<1x2x32xf32>
    tpu.vector_store %arg7[%c0_17, %c0_18, %c96], %23 {strides = array<i32>} : memref<1x4x1024xf32, #tpu.memory_space<vmem>>, vector<1x2x32xf32>,
    %24 = vector.extract_strided_slice %6 {offsets = [0, 32], sizes = [2, 16], strides = [1, 1]} : vector<2x256xf32> to vector<2x16xf32>
    %cst_19 = arith.constant dense<0.000000e+00> : vector<2x32xf32>
    %25 = tpu.matmul %24, %7, %cst_19 {dimension_numbers = #tpu.dot_dimension_numbers<[1], [0], [0], [1], [0, 0, 1, 1], [], []>} : vector<2x16xf32>, vector<16x32xf32>, vector<2x32xf32> -> vector<2x32xf32>
    %c0_20 = arith.constant 0 : index
    %c0_21 = arith.constant 0 : index
    %c128 = arith.constant 128 : index
    %26 = vector.load %arg7[%c0_20, %c0_21, %c128] : memref<1x4x1024xf32, #tpu.memory_space<vmem>>, vector<1x2x32xf32>
    %27 = vector.shape_cast %26 : vector<1x2x32xf32> to vector<2x32xf32>
    %28 = vector.shape_cast %25 : vector<2x32xf32> to vector<1x2x32xf32>
    tpu.vector_store %arg7[%c0_20, %c0_21, %c128], %28 {strides = array<i32>} : memref<1x4x1024xf32, #tpu.memory_space<vmem>>, vector<1x2x32xf32>,
    %c0_22 = arith.constant 0 : index
    %c0_23 = arith.constant 0 : index
    %c160 = arith.constant 160 : index
    %29 = vector.load %arg7[%c0_22, %c0_23, %c160] : memref<1x4x1024xf32, #tpu.memory_space<vmem>>, vector<1x2x32xf32>
    %30 = vector.shape_cast %29 : vector<1x2x32xf32> to vector<2x32xf32>
    %31 = vector.shape_cast %25 : vector<2x32xf32> to vector<1x2x32xf32>
    tpu.vector_store %arg7[%c0_22, %c0_23, %c160], %31 {strides = array<i32>} : memref<1x4x1024xf32, #tpu.memory_space<vmem>>, vector<1x2x32xf32>,
    %32 = vector.extract_strided_slice %6 {offsets = [0, 48], sizes = [2, 16], strides = [1, 1]} : vector<2x256xf32> to vector<2x16xf32>
    %cst_24 = arith.constant dense<0.000000e+00> : vector<2x32xf32>
    %33 = tpu.matmul %32, %7, %cst_24 {dimension_numbers = #tpu.dot_dimension_numbers<[1], [0], [0], [1], [0, 0, 1, 1], [], []>} : vector<2x16xf32>, vector<16x32xf32>, vector<2x32xf32> -> vector<2x32xf32>
    %c0_25 = arith.constant 0 : index
    %c0_26 = arith.constant 0 : index
    %c192 = arith.constant 192 : index
    %34 = vector.load %arg7[%c0_25, %c0_26, %c192] : memref<1x4x1024xf32, #tpu.memory_space<vmem>>, vector<1x2x32xf32>
    %35 = vector.shape_cast %34 : vector<1x2x32xf32> to vector<2x32xf32>
    %36 = vector.shape_cast %33 : vector<2x32xf32> to vector<1x2x32xf32>
    tpu.vector_store %arg7[%c0_25, %c0_26, %c192], %36 {strides = array<i32>} : memref<1x4x1024xf32, #tpu.memory_space<vmem>>, vector<1x2x32xf32>,
    %c0_27 = arith.constant 0 : index
    %c0_28 = arith.constant 0 : index
    %c224 = arith.constant 224 : index
    %37 = vector.load %arg7[%c0_27, %c0_28, %c224] : memref<1x4x1024xf32, #tpu.memory_space<vmem>>, vector<1x2x32xf32>
    %38 = vector.shape_cast %37 : vector<1x2x32xf32> to vector<2x32xf32>
    %39 = vector.shape_cast %33 : vector<2x32xf32> to vector<1x2x32xf32>
    tpu.vector_store %arg7[%c0_27, %c0_28, %c224], %39 {strides = array<i32>} : memref<1x4x1024xf32, #tpu.memory_space<vmem>>, vector<1x2x32xf32>,
    %40 = vector.extract_strided_slice %6 {offsets = [0, 64], sizes = [2, 16], strides = [1, 1]} : vector<2x256xf32> to vector<2x16xf32>
    %cst_29 = arith.constant dense<0.000000e+00> : vector<2x32xf32>
    %41 = tpu.matmul %40, %7, %cst_29 {dimension_numbers = #tpu.dot_dimension_numbers<[1], [0], [0], [1], [0, 0, 1, 1], [], []>} : vector<2x16xf32>, vector<16x32xf32>, vector<2x32xf32> -> vector<2x32xf32>
    %c0_30 = arith.constant 0 : index
    %c0_31 = arith.constant 0 : index
    %c256 = arith.constant 256 : index
    %42 = vector.load %arg7[%c0_30, %c0_31, %c256] : memref<1x4x1024xf32, #tpu.memory_space<vmem>>, vector<1x2x32xf32>
    %43 = vector.shape_cast %42 : vector<1x2x32xf32> to vector<2x32xf32>
    %44 = vector.shape_cast %41 : vector<2x32xf32> to vector<1x2x32xf32>
    tpu.vector_store %arg7[%c0_30, %c0_31, %c256], %44 {strides = array<i32>} : memref<1x4x1024xf32, #tpu.memory_space<vmem>>, vector<1x2x32xf32>,
    %c0_32 = arith.constant 0 : index
    %c0_33 = arith.constant 0 : index
    %c288 = arith.constant 288 : index
    %45 = vector.load %arg7[%c0_32, %c0_33, %c288] : memref<1x4x1024xf32, #tpu.memory_space<vmem>>, vector<1x2x32xf32>
    %46 = vector.shape_cast %45 : vector<1x2x32xf32> to vector<2x32xf32>
    %47 = vector.shape_cast %41 : vector<2x32xf32> to vector<1x2x32xf32>
    tpu.vector_store %arg7[%c0_32, %c0_33, %c288], %47 {strides = array<i32>} : memref<1x4x1024xf32, #tpu.memory_space<vmem>>, vector<1x2x32xf32>,
    %48 = vector.extract_strided_slice %6 {offsets = [0, 80], sizes = [2, 16], strides = [1, 1]} : vector<2x256xf32> to vector<2x16xf32>
    %cst_34 = arith.constant dense<0.000000e+00> : vector<2x32xf32>
    %49 = tpu.matmul %48, %7, %cst_34 {dimension_numbers = #tpu.dot_dimension_numbers<[1], [0], [0], [1], [0, 0, 1, 1], [], []>} : vector<2x16xf32>, vector<16x32xf32>, vector<2x32xf32> -> vector<2x32xf32>
    %c0_35 = arith.constant 0 : index
    %c0_36 = arith.constant 0 : index
    %c320 = arith.constant 320 : index
    %50 = vector.load %arg7[%c0_35, %c0_36, %c320] : memref<1x4x1024xf32, #tpu.memory_space<vmem>>, vector<1x2x32xf32>
    %51 = vector.shape_cast %50 : vector<1x2x32xf32> to vector<2x32xf32>
    %52 = vector.shape_cast %49 : vector<2x32xf32> to vector<1x2x32xf32>
    tpu.vector_store %arg7[%c0_35, %c0_36, %c320], %52 {strides = array<i32>} : memref<1x4x1024xf32, #tpu.memory_space<vmem>>, vector<1x2x32xf32>,
    %c0_37 = arith.constant 0 : index
    %c0_38 = arith.constant 0 : index
    %c352 = arith.constant 352 : index
    %53 = vector.load %arg7[%c0_37, %c0_38, %c352] : memref<1x4x1024xf32, #tpu.memory_space<vmem>>, vector<1x2x32xf32>
    %54 = vector.shape_cast %53 : vector<1x2x32xf32> to vector<2x32xf32>
    %55 = vector.shape_cast %49 : vector<2x32xf32> to vector<1x2x32xf32>
    tpu.vector_store %arg7[%c0_37, %c0_38, %c352], %55 {strides = array<i32>} : memref<1x4x1024xf32, #tpu.memory_space<vmem>>, vector<1x2x32xf32>,
    %56 = vector.extract_strided_slice %6 {offsets = [0, 96], sizes = [2, 16], strides = [1, 1]} : vector<2x256xf32> to vector<2x16xf32>
    %cst_39 = arith.constant dense<0.000000e+00> : vector<2x32xf32>
    %57 = tpu.matmul %56, %7, %cst_39 {dimension_numbers = #tpu.dot_dimension_numbers<[1], [0], [0], [1], [0, 0, 1, 1], [], []>} : vector<2x16xf32>, vector<16x32xf32>, vector<2x32xf32> -> vector<2x32xf32>
    %c0_40 = arith.constant 0 : index
    %c0_41 = arith.constant 0 : index
    %c384 = arith.constant 384 : index
    %58 = vector.load %arg7[%c0_40, %c0_41, %c384] : memref<1x4x1024xf32, #tpu.memory_space<vmem>>, vector<1x2x32xf32>
    %59 = vector.shape_cast %58 : vector<1x2x32xf32> to vector<2x32xf32>
    %60 = vector.shape_cast %57 : vector<2x32xf32> to vector<1x2x32xf32>
    tpu.vector_store %arg7[%c0_40, %c0_41, %c384], %60 {strides = array<i32>} : memref<1x4x1024xf32, #tpu.memory_space<vmem>>, vector<1x2x32xf32>,
    %c0_42 = arith.constant 0 : index
    %c0_43 = arith.constant 0 : index
    %c416 = arith.constant 416 : index
    %61 = vector.load %arg7[%c0_42, %c0_43, %c416] : memref<1x4x1024xf32, #tpu.memory_space<vmem>>, vector<1x2x32xf32>
    %62 = vector.shape_cast %61 : vector<1x2x32xf32> to vector<2x32xf32>
    %63 = vector.shape_cast %57 : vector<2x32xf32> to vector<1x2x32xf32>
    tpu.vector_store %arg7[%c0_42, %c0_43, %c416], %63 {strides = array<i32>} : memref<1x4x1024xf32, #tpu.memory_space<vmem>>, vector<1x2x32xf32>,
    %64 = vector.extract_strided_slice %6 {offsets = [0, 112], sizes = [2, 16], strides = [1, 1]} : vector<2x256xf32> to vector<2x16xf32>
    %cst_44 = arith.constant dense<0.000000e+00> : vector<2x32xf32>
    %65 = tpu.matmul %64, %7, %cst_44 {dimension_numbers = #tpu.dot_dimension_numbers<[1], [0], [0], [1], [0, 0, 1, 1], [], []>} : vector<2x16xf32>, vector<16x32xf32>, vector<2x32xf32> -> vector<2x32xf32>
    %c0_45 = arith.constant 0 : index
    %c0_46 = arith.constant 0 : index
    %c448 = arith.constant 448 : index
    %66 = vector.load %arg7[%c0_45, %c0_46, %c448] : memref<1x4x1024xf32, #tpu.memory_space<vmem>>, vector<1x2x32xf32>
    %67 = vector.shape_cast %66 : vector<1x2x32xf32> to vector<2x32xf32>
    %68 = vector.shape_cast %65 : vector<2x32xf32> to vector<1x2x32xf32>
    tpu.vector_store %arg7[%c0_45, %c0_46, %c448], %68 {strides = array<i32>} : memref<1x4x1024xf32, #tpu.memory_space<vmem>>, vector<1x2x32xf32>,
    %c0_47 = arith.constant 0 : index
    %c0_48 = arith.constant 0 : index
    %c480 = arith.constant 480 : index
    %69 = vector.load %arg7[%c0_47, %c0_48, %c480] : memref<1x4x1024xf32, #tpu.memory_space<vmem>>, vector<1x2x32xf32>
    %70 = vector.shape_cast %69 : vector<1x2x32xf32> to vector<2x32xf32>
    %71 = vector.shape_cast %65 : vector<2x32xf32> to vector<1x2x32xf32>
    tpu.vector_store %arg7[%c0_47, %c0_48, %c480], %71 {strides = array<i32>} : memref<1x4x1024xf32, #tpu.memory_space<vmem>>, vector<1x2x32xf32>,
    %72 = vector.extract_strided_slice %6 {offsets = [0, 128], sizes = [2, 16], strides = [1, 1]} : vector<2x256xf32> to vector<2x16xf32>
    %cst_49 = arith.constant dense<0.000000e+00> : vector<2x32xf32>
    %73 = tpu.matmul %72, %7, %cst_49 {dimension_numbers = #tpu.dot_dimension_numbers<[1], [0], [0], [1], [0, 0, 1, 1], [], []>} : vector<2x16xf32>, vector<16x32xf32>, vector<2x32xf32> -> vector<2x32xf32>
    %c0_50 = arith.constant 0 : index
    %c0_51 = arith.constant 0 : index
    %c512 = arith.constant 512 : index
    %74 = vector.load %arg7[%c0_50, %c0_51, %c512] : memref<1x4x1024xf32, #tpu.memory_space<vmem>>, vector<1x2x32xf32>
    %75 = vector.shape_cast %74 : vector<1x2x32xf32> to vector<2x32xf32>
    %76 = vector.shape_cast %73 : vector<2x32xf32> to vector<1x2x32xf32>
    tpu.vector_store %arg7[%c0_50, %c0_51, %c512], %76 {strides = array<i32>} : memref<1x4x1024xf32, #tpu.memory_space<vmem>>, vector<1x2x32xf32>,
    %c0_52 = arith.constant 0 : index
    %c0_53 = arith.constant 0 : index
    %c544 = arith.constant 544 : index
    %77 = vector.load %arg7[%c0_52, %c0_53, %c544] : memref<1x4x1024xf32, #tpu.memory_space<vmem>>, vector<1x2x32xf32>
    %78 = vector.shape_cast %77 : vector<1x2x32xf32> to vector<2x32xf32>
    %79 = vector.shape_cast %73 : vector<2x32xf32> to vector<1x2x32xf32>
    tpu.vector_store %arg7[%c0_52, %c0_53, %c544], %79 {strides = array<i32>} : memref<1x4x1024xf32, #tpu.memory_space<vmem>>, vector<1x2x32xf32>,
    %80 = vector.extract_strided_slice %6 {offsets = [0, 144], sizes = [2, 16], strides = [1, 1]} : vector<2x256xf32> to vector<2x16xf32>
    %cst_54 = arith.constant dense<0.000000e+00> : vector<2x32xf32>
    %81 = tpu.matmul %80, %7, %cst_54 {dimension_numbers = #tpu.dot_dimension_numbers<[1], [0], [0], [1], [0, 0, 1, 1], [], []>} : vector<2x16xf32>, vector<16x32xf32>, vector<2x32xf32> -> vector<2x32xf32>
    %c0_55 = arith.constant 0 : index
    %c0_56 = arith.constant 0 : index
    %c576 = arith.constant 576 : index
    %82 = vector.load %arg7[%c0_55, %c0_56, %c576] : memref<1x4x1024xf32, #tpu.memory_space<vmem>>, vector<1x2x32xf32>
    %83 = vector.shape_cast %82 : vector<1x2x32xf32> to vector<2x32xf32>
    %84 = vector.shape_cast %81 : vector<2x32xf32> to vector<1x2x32xf32>
    tpu.vector_store %arg7[%c0_55, %c0_56, %c576], %84 {strides = array<i32>} : memref<1x4x1024xf32, #tpu.memory_space<vmem>>, vector<1x2x32xf32>,
    %c0_57 = arith.constant 0 : index
    %c0_58 = arith.constant 0 : index
    %c608 = arith.constant 608 : index
    %85 = vector.load %arg7[%c0_57, %c0_58, %c608] : memref<1x4x1024xf32, #tpu.memory_space<vmem>>, vector<1x2x32xf32>
    %86 = vector.shape_cast %85 : vector<1x2x32xf32> to vector<2x32xf32>
    %87 = vector.shape_cast %81 : vector<2x32xf32> to vector<1x2x32xf32>
    tpu.vector_store %arg7[%c0_57, %c0_58, %c608], %87 {strides = array<i32>} : memref<1x4x1024xf32, #tpu.memory_space<vmem>>, vector<1x2x32xf32>,
    %88 = vector.extract_strided_slice %6 {offsets = [0, 160], sizes = [2, 16], strides = [1, 1]} : vector<2x256xf32> to vector<2x16xf32>
    %cst_59 = arith.constant dense<0.000000e+00> : vector<2x32xf32>
    %89 = tpu.matmul %88, %7, %cst_59 {dimension_numbers = #tpu.dot_dimension_numbers<[1], [0], [0], [1], [0, 0, 1, 1], [], []>} : vector<2x16xf32>, vector<16x32xf32>, vector<2x32xf32> -> vector<2x32xf32>
    %c0_60 = arith.constant 0 : index
    %c0_61 = arith.constant 0 : index
    %c640 = arith.constant 640 : index
    %90 = vector.load %arg7[%c0_60, %c0_61, %c640] : memref<1x4x1024xf32, #tpu.memory_space<vmem>>, vector<1x2x32xf32>
    %91 = vector.shape_cast %90 : vector<1x2x32xf32> to vector<2x32xf32>
    %92 = vector.shape_cast %89 : vector<2x32xf32> to vector<1x2x32xf32>
    tpu.vector_store %arg7[%c0_60, %c0_61, %c640], %92 {strides = array<i32>} : memref<1x4x1024xf32, #tpu.memory_space<vmem>>, vector<1x2x32xf32>,
    %c0_62 = arith.constant 0 : index
    %c0_63 = arith.constant 0 : index
    %c672 = arith.constant 672 : index
    %93 = vector.load %arg7[%c0_62, %c0_63, %c672] : memref<1x4x1024xf32, #tpu.memory_space<vmem>>, vector<1x2x32xf32>
    %94 = vector.shape_cast %93 : vector<1x2x32xf32> to vector<2x32xf32>
    %95 = vector.shape_cast %89 : vector<2x32xf32> to vector<1x2x32xf32>
    tpu.vector_store %arg7[%c0_62, %c0_63, %c672], %95 {strides = array<i32>} : memref<1x4x1024xf32, #tpu.memory_space<vmem>>, vector<1x2x32xf32>,
    %96 = vector.extract_strided_slice %6 {offsets = [0, 176], sizes = [2, 16], strides = [1, 1]} : vector<2x256xf32> to vector<2x16xf32>
    %cst_64 = arith.constant dense<0.000000e+00> : vector<2x32xf32>
    %97 = tpu.matmul %96, %7, %cst_64 {dimension_numbers = #tpu.dot_dimension_numbers<[1], [0], [0], [1], [0, 0, 1, 1], [], []>} : vector<2x16xf32>, vector<16x32xf32>, vector<2x32xf32> -> vector<2x32xf32>
    %c0_65 = arith.constant 0 : index
    %c0_66 = arith.constant 0 : index
    %c704 = arith.constant 704 : index
    %98 = vector.load %arg7[%c0_65, %c0_66, %c704] : memref<1x4x1024xf32, #tpu.memory_space<vmem>>, vector<1x2x32xf32>
    %99 = vector.shape_cast %98 : vector<1x2x32xf32> to vector<2x32xf32>
    %100 = vector.shape_cast %97 : vector<2x32xf32> to vector<1x2x32xf32>
    tpu.vector_store %arg7[%c0_65, %c0_66, %c704], %100 {strides = array<i32>} : memref<1x4x1024xf32, #tpu.memory_space<vmem>>, vector<1x2x32xf32>,
    %c0_67 = arith.constant 0 : index
    %c0_68 = arith.constant 0 : index
    %c736 = arith.constant 736 : index
    %101 = vector.load %arg7[%c0_67, %c0_68, %c736] : memref<1x4x1024xf32, #tpu.memory_space<vmem>>, vector<1x2x32xf32>
    %102 = vector.shape_cast %101 : vector<1x2x32xf32> to vector<2x32xf32>
    %103 = vector.shape_cast %97 : vector<2x32xf32> to vector<1x2x32xf32>
    tpu.vector_store %arg7[%c0_67, %c0_68, %c736], %103 {strides = array<i32>} : memref<1x4x1024xf32, #tpu.memory_space<vmem>>, vector<1x2x32xf32>,
    %104 = vector.extract_strided_slice %6 {offsets = [0, 192], sizes = [2, 16], strides = [1, 1]} : vector<2x256xf32> to vector<2x16xf32>
    %cst_69 = arith.constant dense<0.000000e+00> : vector<2x32xf32>
    %105 = tpu.matmul %104, %7, %cst_69 {dimension_numbers = #tpu.dot_dimension_numbers<[1], [0], [0], [1], [0, 0, 1, 1], [], []>} : vector<2x16xf32>, vector<16x32xf32>, vector<2x32xf32> -> vector<2x32xf32>
    %c0_70 = arith.constant 0 : index
    %c0_71 = arith.constant 0 : index
    %c768 = arith.constant 768 : index
    %106 = vector.load %arg7[%c0_70, %c0_71, %c768] : memref<1x4x1024xf32, #tpu.memory_space<vmem>>, vector<1x2x32xf32>
    %107 = vector.shape_cast %106 : vector<1x2x32xf32> to vector<2x32xf32>
    %108 = vector.shape_cast %105 : vector<2x32xf32> to vector<1x2x32xf32>
    tpu.vector_store %arg7[%c0_70, %c0_71, %c768], %108 {strides = array<i32>} : memref<1x4x1024xf32, #tpu.memory_space<vmem>>, vector<1x2x32xf32>,
    %c0_72 = arith.constant 0 : index
    %c0_73 = arith.constant 0 : index
    %c800 = arith.constant 800 : index
    %109 = vector.load %arg7[%c0_72, %c0_73, %c800] : memref<1x4x1024xf32, #tpu.memory_space<vmem>>, vector<1x2x32xf32>
    %110 = vector.shape_cast %109 : vector<1x2x32xf32> to vector<2x32xf32>
    %111 = vector.shape_cast %105 : vector<2x32xf32> to vector<1x2x32xf32>
    tpu.vector_store %arg7[%c0_72, %c0_73, %c800], %111 {strides = array<i32>} : memref<1x4x1024xf32, #tpu.memory_space<vmem>>, vector<1x2x32xf32>,
    %112 = vector.extract_strided_slice %6 {offsets = [0, 208], sizes = [2, 16], strides = [1, 1]} : vector<2x256xf32> to vector<2x16xf32>
    %cst_74 = arith.constant dense<0.000000e+00> : vector<2x32xf32>
    %113 = tpu.matmul %112, %7, %cst_74 {dimension_numbers = #tpu.dot_dimension_numbers<[1], [0], [0], [1], [0, 0, 1, 1], [], []>} : vector<2x16xf32>, vector<16x32xf32>, vector<2x32xf32> -> vector<2x32xf32>
    %c0_75 = arith.constant 0 : index
    %c0_76 = arith.constant 0 : index
    %c832 = arith.constant 832 : index
    %114 = vector.load %arg7[%c0_75, %c0_76, %c832] : memref<1x4x1024xf32, #tpu.memory_space<vmem>>, vector<1x2x32xf32>
    %115 = vector.shape_cast %114 : vector<1x2x32xf32> to vector<2x32xf32>
    %116 = vector.shape_cast %113 : vector<2x32xf32> to vector<1x2x32xf32>
    tpu.vector_store %arg7[%c0_75, %c0_76, %c832], %116 {strides = array<i32>} : memref<1x4x1024xf32, #tpu.memory_space<vmem>>, vector<1x2x32xf32>,
    %c0_77 = arith.constant 0 : index
    %c0_78 = arith.constant 0 : index
    %c864 = arith.constant 864 : index
    %117 = vector.load %arg7[%c0_77, %c0_78, %c864] : memref<1x4x1024xf32, #tpu.memory_space<vmem>>, vector<1x2x32xf32>
    %118 = vector.shape_cast %117 : vector<1x2x32xf32> to vector<2x32xf32>
    %119 = vector.shape_cast %113 : vector<2x32xf32> to vector<1x2x32xf32>
    tpu.vector_store %arg7[%c0_77, %c0_78, %c864], %119 {strides = array<i32>} : memref<1x4x1024xf32, #tpu.memory_space<vmem>>, vector<1x2x32xf32>,
    %120 = vector.extract_strided_slice %6 {offsets = [0, 224], sizes = [2, 16], strides = [1, 1]} : vector<2x256xf32> to vector<2x16xf32>
    %cst_79 = arith.constant dense<0.000000e+00> : vector<2x32xf32>
    %121 = tpu.matmul %120, %7, %cst_79 {dimension_numbers = #tpu.dot_dimension_numbers<[1], [0], [0], [1], [0, 0, 1, 1], [], []>} : vector<2x16xf32>, vector<16x32xf32>, vector<2x32xf32> -> vector<2x32xf32>
    %c0_80 = arith.constant 0 : index
    %c0_81 = arith.constant 0 : index
    %c896 = arith.constant 896 : index
    %122 = vector.load %arg7[%c0_80, %c0_81, %c896] : memref<1x4x1024xf32, #tpu.memory_space<vmem>>, vector<1x2x32xf32>
    %123 = vector.shape_cast %122 : vector<1x2x32xf32> to vector<2x32xf32>
    %124 = vector.shape_cast %121 : vector<2x32xf32> to vector<1x2x32xf32>
    tpu.vector_store %arg7[%c0_80, %c0_81, %c896], %124 {strides = array<i32>} : memref<1x4x1024xf32, #tpu.memory_space<vmem>>, vector<1x2x32xf32>,
    %c0_82 = arith.constant 0 : index
    %c0_83 = arith.constant 0 : index
    %c928 = arith.constant 928 : index
    %125 = vector.load %arg7[%c0_82, %c0_83, %c928] : memref<1x4x1024xf32, #tpu.memory_space<vmem>>, vector<1x2x32xf32>
    %126 = vector.shape_cast %125 : vector<1x2x32xf32> to vector<2x32xf32>
    %127 = vector.shape_cast %121 : vector<2x32xf32> to vector<1x2x32xf32>
    tpu.vector_store %arg7[%c0_82, %c0_83, %c928], %127 {strides = array<i32>} : memref<1x4x1024xf32, #tpu.memory_space<vmem>>, vector<1x2x32xf32>,
    %128 = vector.extract_strided_slice %6 {offsets = [0, 240], sizes = [2, 16], strides = [1, 1]} : vector<2x256xf32> to vector<2x16xf32>
    %cst_84 = arith.constant dense<0.000000e+00> : vector<2x32xf32>
    %129 = tpu.matmul %128, %7, %cst_84 {dimension_numbers = #tpu.dot_dimension_numbers<[1], [0], [0], [1], [0, 0, 1, 1], [], []>} : vector<2x16xf32>, vector<16x32xf32>, vector<2x32xf32> -> vector<2x32xf32>
    %c0_85 = arith.constant 0 : index
    %c0_86 = arith.constant 0 : index
    %c960 = arith.constant 960 : index
    %130 = vector.load %arg7[%c0_85, %c0_86, %c960] : memref<1x4x1024xf32, #tpu.memory_space<vmem>>, vector<1x2x32xf32>
    %131 = vector.shape_cast %130 : vector<1x2x32xf32> to vector<2x32xf32>
    %132 = vector.shape_cast %129 : vector<2x32xf32> to vector<1x2x32xf32>
    tpu.vector_store %arg7[%c0_85, %c0_86, %c960], %132 {strides = array<i32>} : memref<1x4x1024xf32, #tpu.memory_space<vmem>>, vector<1x2x32xf32>,
    %c0_87 = arith.constant 0 : index
    %c0_88 = arith.constant 0 : index
    %c992 = arith.constant 992 : index
    %133 = vector.load %arg7[%c0_87, %c0_88, %c992] : memref<1x4x1024xf32, #tpu.memory_space<vmem>>, vector<1x2x32xf32>
    %134 = vector.shape_cast %133 : vector<1x2x32xf32> to vector<2x32xf32>
    %135 = vector.shape_cast %129 : vector<2x32xf32> to vector<1x2x32xf32>
    tpu.vector_store %arg7[%c0_87, %c0_88, %c992], %135 {strides = array<i32>} : memref<1x4x1024xf32, #tpu.memory_space<vmem>>, vector<1x2x32xf32>,
    %c0_89 = arith.constant 0 : index
    %c0_90 = arith.constant 0 : index
    %c0_91 = arith.constant 0 : index
    %136 = vector.load %arg3[%c0_89, %c0_90, %c0_91] : memref<1x2x1024xf32, #tpu.memory_space<vmem>>, vector<1x2x1024xf32>
    %137 = vector.shape_cast %136 : vector<1x2x1024xf32> to vector<2x1024xf32>
    %c0_92 = arith.constant 0 : index
    %c2 = arith.constant 2 : index
    %c0_93 = arith.constant 0 : index
    %138 = vector.load %arg7[%c0_92, %c2, %c0_93] : memref<1x4x1024xf32, #tpu.memory_space<vmem>>, vector<1x2x1024xf32>
    %139 = vector.shape_cast %138 : vector<1x2x1024xf32> to vector<2x1024xf32>
    %140 = vector.shape_cast %137 : vector<2x1024xf32> to vector<1x2x1024xf32>
    tpu.vector_store %arg7[%c0_92, %c2, %c0_93], %140 {strides = array<i32>} : memref<1x4x1024xf32, #tpu.memory_space<vmem>>, vector<1x2x1024xf32>,
    return
  }
  func.func @transform_0(%arg0: i32, %arg1: i32) -> (i32, i32, i32) {
    %c0_i32 = arith.constant 0 : i32
    %c0_i32_0 = arith.constant 0 : i32
    return %arg0, %c0_i32, %arg1 : i32, i32, i32
  }
  func.func @transform_1(%arg0: i32, %arg1: i32) -> (i32, i32, i32) {
    %c0_i32 = arith.constant 0 : i32
    %c0_i32_0 = arith.constant 0 : i32
    return %arg0, %c0_i32, %arg1 : i32, i32, i32
  }
  func.func @transform_2(%arg0: i32, %arg1: i32) -> (i32, i32) {
    %c0_i32 = arith.constant 0 : i32
    %c0_i32_0 = arith.constant 0 : i32
    %c0_i32_1 = arith.constant 0 : i32
    return %c0_i32, %c0_i32_0 : i32, i32
  }
  func.func @transform_3(%arg0: i32, %arg1: i32) -> (i32, i32) {
    %c0_i32 = arith.constant 0 : i32
    %c0_i32_0 = arith.constant 0 : i32
    %c0_i32_1 = arith.constant 0 : i32
    return %c0_i32, %c0_i32_0 : i32, i32
  }
  func.func @transform_4(%arg0: i32, %arg1: i32) -> (i32, i32) {
    %c0_i32 = arith.constant 0 : i32
    %c0_i32_0 = arith.constant 0 : i32
    %c0_i32_1 = arith.constant 0 : i32
    return %c0_i32, %c0_i32_0 : i32, i32
  }
  func.func @transform_5(%arg0: i32, %arg1: i32) -> (i32, i32, i32) {
    %c0_i32 = arith.constant 0 : i32
    %c0_i32_0 = arith.constant 0 : i32
    return %arg0, %c0_i32, %arg1 : i32, i32, i32
  }
}

</mosaic_0001>

<bundles_post_ra>
// kernel: tpu_custom_call.1
= control target key start
LH: loop header
LB: loop body
LE: loop exit
PB: predicated region body
PF: predicated region fallthrough
CT: control target
= control target key end

     0   :  { %s2836_s0 = inlined_call_operand.hbm [shape: f32[2,4,256], index: 0, kind: input, shape index: {}]   ;;  %s2837_s1 = inlined_call_operand.hbm [shape: f32[2,2,1024], index: 1, kind: input, shape index: {}]   ;;  %s2838_s2 = inlined_call_operand.vmem [shape: f32[2,4], index: 2, kind: input, shape index: {}]   ;;  %s2839_s3 = inlined_call_operand.vmem [shape: f32[2,1], index: 3, kind: input, shape index: {}]   ;;  %s2840_s4 = inlined_call_operand.hbm [shape: f32[16,32], index: 4, kind: input, shape index: {}]   ;;  %s2841_s5 = inlined_call_operand.hbm [shape: f32[2,4,1024], index: 5, kind: output, shape index: {}]  }
   0x1   :  { %2844 = sst [smem:[#allocation16_spill]] %s2836_s0 }
   0x2   :  { %2845 = sst [smem:[#allocation17_spill]] %s2840_s4 }
   0x3   :  { %10 = vsyncpa [#allocation3], 0 }
   0x4   :  { %12 = vsyncpa [#allocation3 + $0x1], 0 }
   0x5   :  { %13 = vsyncpa [#allocation6], 0 }
   0x6   :  { %15 = vsyncpa [#allocation6 + $0x1], 0 }
   0x7   :  { %16 = vsyncpa [#allocation4], 0 }
   0x8   :  { %18 = vsyncpa [#allocation4 + $0x1], 0  ;;  %s2414_s18 = smov 0   ;;  %s2416_s19 = smov 0  }
   0x9   :  { %s2418_s20 = smov 0   ;;  %s2420_s21 = smov 0  }
   0xa   :  { %s2422_s22 = smov 0   ;;  %s2424_s23 = smov 0  }
   0xb LB: > { %2846 = sst [smem:[#allocation13_spill]] %s2354_s20  ;;  %s2445_s24 = sadd.s32 4294967295, %s2366_s23   ;;  %s2366_s23 = sphi %s2424_s23, %s24_s23   ;;  %s2362_s22 = sphi %s2422_s22, %s2866_s22   ;;  %s2358_s21 = sphi %s2420_s21, %s2865_s21   ;;  %s2354_s20 = sphi %s2418_s20, %s2861_s20   ;;  %s2350_s19 = sphi %s2416_s19, %s2864_s19   ;;  %s2346_s18 = sphi %s2414_s18, %s2863_s18  }
   0xc   : > { %s1896_s25 = sadd.s32 4294967294, %s2366_s23   ;;  %p58_p0 = scmp.ne.s32.totalorder %s2350_s19, %s2346_s18 }
   0xd   : > { %p59_p1 = scmp.eq.s32.totalorder %s2445_s24, 0  ;;  %p181_p3 = scmp.eq.s32.totalorder %s1896_s25, 1 }
   0xe   : > { %p1897_p5 = scmp.ge.s32.totalorder %s2366_s23, 1  ;;  %p188_p7 = scmp.lt.s32.totalorder %s2366_s23, 3 }
   0xf   : > { %p2454_p4 = por %p59_p1, %p58_p0  ;;  %p2459_p6 = por %p181_p3, %p58_p0 }
  0x10   : > { %p2464_p8 = pnand %p1897_p5, %p188_p7  ;;  %s2368_s29 = smov [#allocation7]  }
  0x11   : > { %s2848_s27 = scalar_select %p2459_p6, 1, 0 }
  0x12   : > { %s206_s30 = sshll.u32 %s2368_s29, 4  ;;  %p2112_p9 = pneg %p2464_p8  ;;  %s207_s30 = int_to_ptr.vmem [resolvable:$true] %s206_s30 }
  0x13   : > { %p1899_p10 = scmp.ge.s32.totalorder %s2366_s23, 2  ;;  %s36_s7 = sadd.s32 1, %s2362_s22 }
  0x14   : > { %p2473_p11 = pnand %p2112_p9, %p59_p1  ;;  %s2207_s8 = scalar_lea.vmem %s207_s30, 256 }
  0x15   : > { %p2208_p13 = scmp.ne.s32.totalorder %s207_s30, %s2207_s8  ;;  %p2215_p5 = scmp.lt.s32.totalorder %s207_s30, %s207_s30 }
  0x16   : > { %p2198_p12 = pneg %p2473_p11  ;;  %p2216_p7 = scmp.lt.s32.totalorder %s2207_s8, %s2207_s8 }
  0x18   : > { %p2210_p0 = pnand %p2208_p13, %p2198_p12  ;;  %p2217_p2 = por %p2216_p7, %p2215_p5 }
  0x1a   : > { %p2211_p3 = pneg %p2210_p0 }
  0x1c   : > { %p2218_p6 = pnand %p2217_p2, %p2211_p3 }
  0x1e   : > { %2221 = shalt.err (!%p2218_p6)
}
  0x1f   : > { %s2369_s9 = smov 128   ;;  %s2370_s10 = smov 8  }
  0x20   : > { %s2851_s4 = sld [smem:[#allocation17_spill]]  ;;  %p38_p2 = scmp.ge.s32.totalorder %s36_s7, 2 }
  0x21   : > { %s45_s13 = sadd.s32 1, %s2354_s20  ;;  %p52_p6 = scmp.ne.s32.totalorder %s2354_s20, %s2350_s19 }
  0x22   : > { %p53_p9 = scmp.eq.s32.totalorder %s2366_s23, 0  ;;  %s2868_s7 = smov (%p38_p2, %s36_s7), 0 }
  0x23   : > { %2852 = sst [smem:[#allocation14_spill]] %s2868_s7  ;;  %p2854_p13 = scmp.eq.s32.totalorder %s2445_s24, 1 }
  0x24   : > { %p2491_p12 = por %p53_p9, %p52_p6  ;;  %s40_s16 = ssub.s32 %s2362_s22, %s2868_s7 }
  0x25   : > { %p2497_p0 = por %p2854_p13, %p52_p6  ;;  %p43_p3 = scmp.eq.s32.totalorder %s40_s16, 0 }
  0x26   : > { %2115 = dma.hbm_to_vmem [thread:$0]  (!%p2473_p11), %s2851_s4, 256, %s207_s30, [#allocation6], %s2369_s9, %s2369_s9, %s2370_s10  }
  0x27   : > { %p2128_p11 = scmp.lt.s32.totalorder %s2366_s23, 2  ;;  %s2505_s17 = sand.u32 1, %s2354_s20  }
  0x28   : > { %s1900_s25 = sshll.u32 %s2505_s17, 3  ;;  %s1939_s30 = sshll.u32 %s2362_s22, 7 }
  0x29   : > { %s2509_s29 = scalar_select %p43_p3, %s2354_s20, %s45_s13  }
  0x2a   : > { %s2857_s0 = sld [smem:[#allocation16_spill]]  ;;  %s224_s10 = scalar_lea.vmem [#allocation2], %s1900_s25 }
  0x2b   : > { %2856 = sst [smem:[#allocation15_spill]] %s2509_s29  ;;  %s234_s11 = sshll.u32 %s224_s10, 4  ;;  %s235_s11 = int_to_ptr.vmem [resolvable:$true] %s234_s11 }
  0x2c   : > { %p2517_p5 = pnand %p2128_p11, %p2491_p12  ;;  %s241_s16 = sand.u32 1, %s2366_s23  }
  0x2d   : > { %s1903_s4 = sshll.u32 %s2505_s17, 4  ;;  %s221_s7 = scalar_lea.sflag [#allocation3], %s2505_s17 }
  0x2e   : > { %p2224_p7 = pneg %p2517_p5  ;;  %s2235_s13 = scalar_lea.vmem %s235_s11, 128 }
  0x2f   : > { %p2236_p2 = scmp.ne.s32.totalorder %s235_s11, %s2235_s13  ;;  %s2371_s25 = smov [#allocation2]  }
  0x30   : > { %s232_s9 = scalar_lea.hbm %s2857_s0, %s1939_s30  ;;  %s2240_s30 = sshll.u32 %s2371_s25, 4  ;;  %s2241_s30 = int_to_ptr.vmem [resolvable:$false] %s2240_s30 }
  0x31   : > { %p2238_p6 = pnand %p2236_p2, %p2224_p7  ;;  %s2242_s14 = scalar_lea.vmem %s2241_s30, 256 }
  0x32   : > { %p2243_p12 = scmp.lt.s32.totalorder %s235_s11, %s2241_s30  ;;  %p2244_p13 = scmp.lt.s32.totalorder %s2242_s14, %s2235_s13 }
  0x33   : > { %p2239_p9 = pneg %p2238_p6 }
  0x34   : > { %p2245_p11 = por %p2244_p13, %p2243_p12 }
  0x36   : > { %p2246_p3 = pnand %p2245_p11, %p2239_p9 }
  0x38   : > { %2249 = shalt.err (!%p2246_p3)
}
  0x39   : > { %2119 = dma.hbm_to_vmem [thread:$0]  (!%p2517_p5), %s232_s9, 128, %s235_s11, %s221_s7  }
  0x3a   : > { %s1940_s17 = sshll.u32 %s2362_s22, 8  ;;  %s245_s0 = scalar_lea.vmem [#allocation5], %s1903_s4 }
  0x3b   : > { %s253_s10 = scalar_lea.hbm %s2837_s1, %s1940_s17  ;;  %s255_s29 = sshll.u32 %s245_s0, 4  ;;  %s256_s29 = int_to_ptr.vmem [resolvable:$true] %s255_s29 }
  0x3c   : > { %s242_s25 = scalar_lea.sflag [#allocation6], %s241_s16  ;;  %s2263_s20 = scalar_lea.vmem %s256_s29, 256 }
  0x3d   : > { %p2264_p2 = scmp.ne.s32.totalorder %s256_s29, %s2263_s20  ;;  %s2372_s13 = smov [#allocation5]  }
  0x3e   : > { %s2268_s30 = sshll.u32 %s2372_s13, 4  ;;  %s2269_s30 = int_to_ptr.vmem [resolvable:$false] %s2268_s30 }
  0x3f   : > { %p2266_p6 = pnand %p2264_p2, %p2224_p7  ;;  %s2270_s14 = scalar_lea.vmem %s2269_s30, 512 }
  0x40   : > { %p2271_p12 = scmp.lt.s32.totalorder %s256_s29, %s2269_s30  ;;  %p2272_p13 = scmp.lt.s32.totalorder %s2270_s14, %s2263_s20 }
  0x41   : > { %p2267_p9 = pneg %p2266_p6 }
  0x42   : > { %p2273_p11 = por %p2272_p13, %p2271_p12 }
  0x44   : > { %p2274_p3 = pnand %p2273_p11, %p2267_p9 }
  0x46   : > { %2277 = shalt.err (!%p2274_p3)
}
  0x47   : > { %2122 = dma.hbm_to_vmem [thread:$0]  (!%p2517_p5), %s253_s10, 256, %s256_s29, %s242_s25  }
  0x48   : > { %264 = sbr.rel (%p2464_p8) target bundleno = 764 (0x2fc), region = 40  ;;  %s2543_s0 = sand.u32 (!%p2464_p8), 1, %s2350_s19  }
  0x49   : > { %s1907_s4 = sshll.u32 (!%p2464_p8), %s2543_s0, 3  ;;  %s267_s7 = scalar_lea.sflag (!%p2464_p8), [#allocation3], %s2543_s0 }
  0x4a   : > { %s270_s9 = scalar_lea.vmem (!%p2464_p8), [#allocation2], %s1907_s4 }
  0x4d   : > { %2329 = dma.done.wait (%p2454_p4), %s267_s7, 128  }
  0x4e   : > { %2331 = vsyncadd (%p2454_p4), %s267_s7, 4294967168  ;;  %s275_s20 = sand.u32 1, %s2445_s24   ;;  %s1908_s28 = sshll.u32 %s2543_s0, 4 }
  0x4f   : > { %s276_s29 = scalar_lea.sflag [#allocation6], %s275_s20  ;;  %s2553_s11 = scalar_lea.vmem [#allocation5], %s1908_s28 }
  0x50   : > { %2333 = dma.done.wait (%p2454_p4), %s276_s29, 256  }
  0x51   : > { %2335 = vsyncadd (%p2454_p4), %s276_s29, 4294967040 }
  0x52   : > { %2337 = dma.done.wait (%p59_p1), [#allocation6], 256  }
  0x53   : > { %2339 = vsyncadd (%p59_p1), [#allocation6], 4294967040  ;;  %v2373_v0 = vmov 0.0   ;;  %v2374_v1 = vmov 0   ;;  %v319_v2 = vld [vmem:[%s270_s9] sm:$0xff]  ;;  %vm332_vm0 = vcmask 1043456  }
  0x54   : > { %401 = vmatprep.mubr.f32.mxu0 %v2373_v0  ;;  %2192 = vset.pattern.permute.xlu0 %v2374_v1  ;;  %v320_v3 = vld [vmem:[%s2839_s3] sm:$0x3]  ;;  %v327_v4 = vcombine.high %v319_v2, %v319_v2  ;;  %v2568_v5 = vld [vmem:[#allocation7 + $0x8] sm:$0xff]  ;;  %vm328_vm1 = vcmask 31744   ;;  %v2578_v7 = vld [vmem:[#allocation7] sm:$0xff]  ;;  %vm2375_vm2 = vmmov 0  }
  0x55   : > { %1990 = vmatprep.subr.mxu1 %v2373_v0  ;;  %323 = vperm.xlu0 %2192, %v320_v3   ;;  %v318_v6 = vld [vmem:[%s2838_s2] sm:$0x3]  ;;  %vm410_vm3 = vcmask 130048   ;;  %s2376_s17 = smov 96   ;;  %s2377_s6 = smov 112   ;;  %vm484_vm4 = vcmask 254976  }
  0x56   : > { %1991 = vmatpush3.msra.mxu1 %v2568_v5  ;;  %1911 = vmatprep.subr.msk.mxu0 %vm332_vm0, %v327_v4  ;;  %s2378_s8 = smov 80   ;;  %s2379_s10 = smov 64   ;;  %vm490_vm5 = vcmask 517376   ;;  %v1717_v54 = vld [vmem:[%s2553_s11] sm:$0xff]  ;;  %v1718_v55 = vld [vmem:[%s2553_s11 + $0x8] sm:$0xff]  ;;  %vm570_vm6 = vcmask 779776  }
  0x57   : > { %1992 = vmatprep.subr.mxu1 %v2373_v0  ;;  %1912 = vmatpush1.msk.msra.mxu0 %vm332_vm0, %v319_v2  ;;  %s2380_s25 = smov 48   ;;  %s2381_s13 = smov 32   ;;  %v1721_v56 = vcombine.low %v1717_v54, %v1717_v54  ;;  %v1736_v57 = vcombine.low %v1718_v55, %v1718_v55  ;;  %vm575_vm7 = vcmask 1042176  }
  0x58   : > { %1913 = vmatmul.mubr.msk.f32.vlgmr.msra.gmra.mxu0 %vm328_vm1, %v318_v6  ;;  %1997 = vmatprep.subr.mxu0 %v2373_v0  ;;  %s2382_s30 = smov 16   ;;  %s1910_s14 = sshll.u32 %s2543_s0, 5 }
  0x59   : > { %1998 = vmatpush3.msra.mxu0 %v2568_v5  ;;  %1993 = vmatpush3.msra.mxu1 %v2578_v7  ;;  %s2693_s4 = scalar_lea.vmem [#allocation8], %s1910_s14  ;;  %s1941_s7 = sshll.u32 %s2358_s21, 9 }
  0x5a   : > { %1999 = vmatprep.subr.mxu0 %v2373_v0  ;;  %1994 = vmatprep.mubr.msk.f32.mxu1 %vm2375_vm2, %v2373_v0  ;;  %1931 = vst.sshfl [vmem:[%s2693_s4 + $0x8] sm:$0xf0 pattern:$0x76325410] %v1717_v54  ;;  %s1776_s9 = sshll.u32 %s2693_s4, 4  ;;  %s2792_s29 = scalar_lea.hbm %s2841_s5, %s1941_s7  ;;  %s1777_s9 = int_to_ptr.vmem [resolvable:$true] %s1776_s9 }
  0x5b   : > { %2004 = vmatprep.subr.mxu1 %v2373_v0  ;;  %2000 = vmatpush3.msra.mxu0 %v2578_v7  ;;  %1933 = vst.sshfl [vmem:[%s2693_s4 + $0x18] sm:$0xf0 pattern:$0x76325410] %v1718_v55  ;;  %s1760_s11 = scalar_lea.sflag [#allocation4], %s2543_s0  ;;  %s2278_s12 = scalar_lea.vmem %s1777_s9, 512 }
  0x5c   : > { %2001 = vmatprep.mubr.msk.f32.mxu0 %vm2375_vm2, %v2373_v0  ;;  %2011 = vmatprep.subr.mxu0 %v2373_v0  ;;  %1930 = vst.sshfl [vmem:[%s2693_s4] sm:$0xf0 pattern:$0x76325410] %v1721_v56  ;;  %p2279_p1 = scmp.ne.s32.totalorder %s1777_s9, %s2278_s12  ;;  %s2383_s16 = smov [#allocation8]  }
  0x5d   : > { %1932 = vst.sshfl [vmem:[%s2693_s4 + $0x10] sm:$0xf0 pattern:$0x76325410] %v1736_v57  ;;  %s2282_s21 = sshll.u32 %s2383_s16, 4  ;;  %s2283_s21 = int_to_ptr.vmem [resolvable:$false] %s2282_s21 }
  0x5e   : > { %p2280_p4 = pnand %p2279_p1, %p2497_p0  ;;  %s2284_s26 = scalar_lea.vmem %s2283_s21, 1024 }
  0x5f   : > { %p2285_p5 = scmp.lt.s32.totalorder %s1777_s9, %s2283_s21  ;;  %p2286_p7 = scmp.lt.s32.totalorder %s2284_s26, %s2278_s12 }
  0x60   : > { %p2281_p8 = pneg %p2280_p4 }
  0x61   : > { %p2287_p2 = por %p2286_p7, %p2285_p5 }
  0x63   : > { %p2288_p6 = pnand %p2287_p2, %p2281_p8 }
  0xd0   : > { %v324_v8 = vpop.permute.xlu0 %323 }
 0x118   : > { %v403_v9 = vpop.f32.mrf.mxu0 }
 0x119   : > { %v404_v10 = vadd.f32 %v403_v9, %v324_v8 }
 0x11a   : > { %v405_v11 = vpop.f32.mrf.mxu0 }
 0x11b   : > { %577 = vrot.lane.b32.xlu1 %v404_v10, %s2376_s17  ;;  %492 = vrot.lane.b32.xlu0 %v404_v10, %s2377_s6  ;;  %v406_v12 = vadd.f32 %v405_v11, %v324_v8 }
 0x11c   : > { %1995 = vmatmul.mubr.msk.f32.vlgmr.msra.gmra.mxu1 %vm410_vm3, %v404_v10 }
 0x11d   : > { %2005 = vmatpush3.msra.mxu1 %v2568_v5  ;;  %2008 = vmatprep.mubr.msk.f32.mxu1 %vm2375_vm2, %v2373_v0 }
 0x11e   : > { %2006 = vmatprep.subr.mxu1 %v2373_v0 }
 0x11f   : > { %657 = vrot.lane.b32.xlu1 %v404_v10, %s2378_s8  ;;  %740 = vrot.lane.b32.xlu0 %v404_v10, %s2379_s10 }
 0x120   : > { %2007 = vmatpush3.msra.mxu1 %v2578_v7 }
 0x121   : > { %2018 = vmatprep.subr.mxu1 %v2373_v0 }
 0x123   : > { %820 = vrot.lane.b32.xlu1 %v404_v10, %s2380_s25  ;;  %903 = vrot.lane.b32.xlu0 %v404_v10, %s2381_s13 }
 0x127   : > { %983 = vrot.lane.b32.xlu1 %v404_v10, %s2382_s30  ;;  %1145 = vrot.lane.b32.xlu0 %v406_v12, %s2377_s6 }
 0x12b   : > { %1228 = vrot.lane.b32.xlu1 %v406_v12, %s2376_s17  ;;  %1308 = vrot.lane.b32.xlu0 %v406_v12, %s2378_s8 }
 0x12f   : > { %1391 = vrot.lane.b32.xlu1 %v406_v12, %s2379_s10  ;;  %1471 = vrot.lane.b32.xlu0 %v406_v12, %s2380_s25 }
 0x133   : > { %1554 = vrot.lane.b32.xlu1 %v406_v12, %s2381_s13  ;;  %1634 = vrot.lane.b32.xlu0 %v406_v12, %s2382_s30 }
 0x18d   : > { %v578_v13 = vpop.permute.xlu1 %577  ;;  %v493_v14 = vpop.permute.xlu0 %492 }
 0x18e   : > { %2002 = vmatmul.mubr.msk.f32.vlgmr.msra.gmra.mxu0 %vm410_vm3, %v493_v14  ;;  %2009 = vmatmul.mubr.msk.f32.vlgmr.msra.gmra.mxu1 %vm410_vm3, %v578_v13 }
 0x18f   : > { %2012 = vmatpush3.msra.mxu0 %v2568_v5  ;;  %2019 = vmatpush3.msra.mxu1 %v2568_v5 }
 0x190   : > { %2013 = vmatprep.subr.mxu0 %v2373_v0  ;;  %2020 = vmatprep.subr.mxu1 %v2373_v0 }
 0x191   : > { %2014 = vmatpush3.msra.mxu0 %v2578_v7  ;;  %v658_v15 = vpop.permute.xlu1 %657  ;;  %2015 = vmatprep.mubr.msk.f32.mxu0 %vm2375_vm2, %v2373_v0  ;;  %v741_v16 = vpop.permute.xlu0 %740 }
 0x192   : > { %2021 = vmatpush3.msra.mxu1 %v2578_v7  ;;  %2022 = vmatprep.mubr.msk.f32.mxu1 %vm2375_vm2, %v2373_v0 }
 0x193   : > { %2016 = vmatmul.mubr.msk.f32.vlgmr.msra.gmra.mxu0 %vm410_vm3, %v658_v15  ;;  %2023 = vmatmul.mubr.msk.f32.vlgmr.msra.gmra.mxu1 %vm410_vm3, %v741_v16 }
 0x194   : > { %2025 = vmatprep.subr.mxu0 %v2373_v0  ;;  %2032 = vmatprep.subr.mxu1 %v2373_v0 }
 0x195   : > { %2026 = vmatpush3.msra.mxu0 %v2568_v5  ;;  %2033 = vmatpush3.msra.mxu1 %v2568_v5  ;;  %v821_v17 = vpop.permute.xlu1 %820  ;;  %v904_v18 = vpop.permute.xlu0 %903 }
 0x196   : > { %2027 = vmatprep.subr.mxu0 %v2373_v0  ;;  %2034 = vmatprep.subr.mxu1 %v2373_v0 }
 0x197   : > { %2028 = vmatpush3.msra.mxu0 %v2578_v7  ;;  %2029 = vmatprep.mubr.msk.f32.mxu0 %vm2375_vm2, %v2373_v0 }
 0x198   : > { %2035 = vmatpush3.msra.mxu1 %v2578_v7  ;;  %2036 = vmatprep.mubr.msk.f32.mxu1 %vm2375_vm2, %v2373_v0 }
 0x199   : > { %2030 = vmatmul.mubr.msk.f32.vlgmr.msra.gmra.mxu0 %vm410_vm3, %v821_v17  ;;  %2037 = vmatmul.mubr.msk.f32.vlgmr.msra.gmra.mxu1 %vm410_vm3, %v904_v18  ;;  %v984_v19 = vpop.permute.xlu1 %983  ;;  %v1146_v21 = vpop.permute.xlu0 %1145 }
 0x19a   : > { %2039 = vmatprep.subr.mxu0 %v2373_v0  ;;  %2046 = vmatprep.subr.mxu1 %v2373_v0 }
 0x19b   : > { %2040 = vmatpush3.msra.mxu0 %v2568_v5  ;;  %2047 = vmatpush3.msra.mxu1 %v2568_v5 }
 0x19c   : > { %2041 = vmatprep.subr.mxu0 %v2373_v0  ;;  %2048 = vmatprep.subr.mxu1 %v2373_v0 }
 0x19d   : > { %2042 = vmatpush3.msra.mxu0 %v2578_v7  ;;  %2043 = vmatprep.mubr.msk.f32.mxu0 %vm2375_vm2, %v2373_v0  ;;  %v1229_v20 = vpop.permute.xlu1 %1228  ;;  %v1309_v23 = vpop.permute.xlu0 %1308 }
 0x19e   : > { %2049 = vmatpush3.msra.mxu1 %v2578_v7  ;;  %2050 = vmatprep.mubr.msk.f32.mxu1 %vm2375_vm2, %v2373_v0 }
 0x19f   : > { %2044 = vmatmul.mubr.msk.f32.vlgmr.msra.gmra.mxu0 %vm410_vm3, %v984_v19  ;;  %2051 = vmatmul.mubr.msk.f32.vlgmr.msra.gmra.mxu1 %vm410_vm3, %v406_v12 }
 0x1a0   : > { %2053 = vmatprep.subr.mxu0 %v2373_v0  ;;  %2060 = vmatprep.subr.mxu1 %v2373_v0 }
 0x1a1   : > { %2054 = vmatpush3.msra.mxu0 %v2568_v5  ;;  %2061 = vmatpush3.msra.mxu1 %v2568_v5  ;;  %v1392_v22 = vpop.permute.xlu1 %1391  ;;  %v1472_v25 = vpop.permute.xlu0 %1471 }
 0x1a2   : > { %2055 = vmatprep.subr.mxu0 %v2373_v0  ;;  %2062 = vmatprep.subr.mxu1 %v2373_v0 }
 0x1a3   : > { %2056 = vmatpush3.msra.mxu0 %v2578_v7  ;;  %2057 = vmatprep.mubr.msk.f32.mxu0 %vm2375_vm2, %v2373_v0 }
 0x1a4   : > { %2063 = vmatpush3.msra.mxu1 %v2578_v7  ;;  %2064 = vmatprep.mubr.msk.f32.mxu1 %vm2375_vm2, %v2373_v0 }
 0x1a5   : > { %2058 = vmatmul.mubr.msk.f32.vlgmr.msra.gmra.mxu0 %vm410_vm3, %v1146_v21  ;;  %2065 = vmatmul.mubr.msk.f32.vlgmr.msra.gmra.mxu1 %vm410_vm3, %v1229_v20  ;;  %v1555_v24 = vpop.permute.xlu1 %1554  ;;  %v1635_v26 = vpop.permute.xlu0 %1634 }
 0x1a6   : > { %2067 = vmatprep.subr.mxu0 %v2373_v0  ;;  %2074 = vmatprep.subr.mxu1 %v2373_v0 }
 0x1a7   : > { %2068 = vmatpush3.msra.mxu0 %v2568_v5  ;;  %2075 = vmatpush3.msra.mxu1 %v2568_v5 }
 0x1a8   : > { %2069 = vmatprep.subr.mxu0 %v2373_v0  ;;  %2076 = vmatprep.subr.mxu1 %v2373_v0 }
 0x1a9   : > { %2070 = vmatpush3.msra.mxu0 %v2578_v7  ;;  %2071 = vmatprep.mubr.msk.f32.mxu0 %vm2375_vm2, %v2373_v0 }
 0x1aa   : > { %2077 = vmatpush3.msra.mxu1 %v2578_v7  ;;  %2078 = vmatprep.mubr.msk.f32.mxu1 %vm2375_vm2, %v2373_v0 }
 0x1ab   : > { %2072 = vmatmul.mubr.msk.f32.vlgmr.msra.gmra.mxu0 %vm410_vm3, %v1309_v23  ;;  %2079 = vmatmul.mubr.msk.f32.vlgmr.msra.gmra.mxu1 %vm410_vm3, %v1392_v22 }
 0x1ac   : > { %2081 = vmatprep.subr.mxu0 %v2373_v0  ;;  %2088 = vmatprep.subr.mxu1 %v2373_v0 }
 0x1ad   : > { %2082 = vmatpush3.msra.mxu0 %v2568_v5  ;;  %2089 = vmatpush3.msra.mxu1 %v2568_v5 }
 0x1ae   : > { %2083 = vmatprep.subr.mxu0 %v2373_v0  ;;  %2090 = vmatprep.subr.mxu1 %v2373_v0 }
 0x1af   : > { %2084 = vmatpush3.msra.mxu0 %v2578_v7  ;;  %2085 = vmatprep.mubr.msk.f32.mxu0 %vm2375_vm2, %v2373_v0 }
 0x1b0   : > { %2091 = vmatpush3.msra.mxu1 %v2578_v7  ;;  %2092 = vmatprep.mubr.msk.f32.mxu1 %vm2375_vm2, %v2373_v0 }
 0x1b1   : > { %2086 = vmatmul.mubr.msk.f32.vlgmr.msra.gmra.mxu0 %vm410_vm3, %v1472_v25  ;;  %2093 = vmatmul.mubr.msk.f32.vlgmr.msra.gmra.mxu1 %vm410_vm3, %v1555_v24 }
 0x1b2   : > { %2095 = vmatprep.subr.mxu0 %v2373_v0  ;;  %2099 = vmatprep.mubr.msk.f32.mxu0 %vm2375_vm2, %v2373_v0 }
 0x1b3   : > { %2096 = vmatpush3.msra.mxu0 %v2568_v5 }
 0x1b4   : > { %2097 = vmatprep.subr.mxu0 %v2373_v0 }
 0x1b5   : > { %2098 = vmatpush3.msra.mxu0 %v2578_v7 }
 0x1b6   : > { %2100 = vmatmul.mubr.msk.f32.vlgmr.msra.gmra.mxu0 %vm410_vm3, %v1635_v26 }
 0x1dc   : > { %v480_v27 = vpop.f32.mrf.mxu1 }
 0x1dd   : > { %485 = vst.msk [vmem:[%s2693_s4] sm:$0x3] %vm484_vm4, %v480_v27  ;;  %487 = vrot.lane.b32.xlu1 %v480_v27, %s2381_s13 }
 0x1de   : > { %v1996_v28 = vpop.f32.mrf.mxu1 }
 0x24e   : > { %v562_v29 = vpop.f32.mrf.mxu0  ;;  %v647_v30 = vpop.f32.mrf.mxu1 }
 0x24f   : > { %v488_v31 = vpop.permute.xlu1 %487  ;;  %651 = vst.msk [vmem:[%s2693_s4 + $0x4] sm:$0x3] %vm484_vm4, %v647_v30  ;;  %567 = vrot.lane.b32.xlu1 %v562_v29, %s2379_s10  ;;  %653 = vrot.lane.b32.xlu0 %v647_v30, %s2381_s13 }
 0x250   : > { %491 = vst.msk [vmem:[%s2693_s4] sm:$0x3] %vm490_vm5, %v488_v31  ;;  %v2003_v32 = vpop.f32.mrf.mxu0  ;;  %v2010_v33 = vpop.f32.mrf.mxu1 }
 0x253   : > { %v727_v34 = vpop.f32.mrf.mxu0  ;;  %v810_v35 = vpop.f32.mrf.mxu1  ;;  %572 = vrot.lane.b32.xlu1 %v562_v29, %s2376_s17 }
 0x254   : > { %814 = vst.msk [vmem:[%s2693_s4 + $0x8] sm:$0x3] %vm484_vm4, %v810_v35  ;;  %732 = vrot.lane.b32.xlu0 %v727_v34, %s2379_s10 }
 0x255   : > { %v2017_v36 = vpop.f32.mrf.mxu0  ;;  %v2024_v37 = vpop.f32.mrf.mxu1 }
 0x257   : > { %816 = vrot.lane.b32.xlu1 %v810_v35, %s2381_s13 }
 0x258   : > { %736 = vrot.lane.b32.xlu0 %v727_v34, %s2376_s17 }
 0x259   : > { %v890_v38 = vpop.f32.mrf.mxu0  ;;  %v973_v39 = vpop.f32.mrf.mxu1 }
 0x25a   : > { %977 = vst.msk [vmem:[%s2693_s4 + $0xc] sm:$0x3] %vm484_vm4, %v973_v39 }
 0x25b   : > { %v2031_v40 = vpop.f32.mrf.mxu0  ;;  %v2038_v41 = vpop.f32.mrf.mxu1  ;;  %895 = vrot.lane.b32.xlu1 %v890_v38, %s2379_s10 }
 0x25c   : > { %979 = vrot.lane.b32.xlu0 %v973_v39, %s2381_s13 }
 0x25f   : > { %v1053_v42 = vpop.f32.mrf.mxu0  ;;  %v1135_v43 = vpop.f32.mrf.mxu1  ;;  %899 = vrot.lane.b32.xlu1 %v890_v38, %s2376_s17 }
 0x260   : > { %1139 = vst.msk [vmem:[%s2693_s4 + $0x10] sm:$0x3] %vm484_vm4, %v1135_v43  ;;  %1058 = vrot.lane.b32.xlu0 %v1053_v42, %s2379_s10 }
 0x261   : > { %v2045_v44 = vpop.f32.mrf.mxu0  ;;  %v2052_v45 = vpop.f32.mrf.mxu1 }
 0x263   : > { %1141 = vrot.lane.b32.xlu1 %v1135_v43, %s2381_s13 }
 0x264   : > { %1062 = vrot.lane.b32.xlu0 %v1053_v42, %s2376_s17 }
 0x265   : > { %v1215_v46 = vpop.f32.mrf.mxu0  ;;  %v1298_v47 = vpop.f32.mrf.mxu1 }
 0x266   : > { %1302 = vst.msk [vmem:[%s2693_s4 + $0x14] sm:$0x3] %vm484_vm4, %v1298_v47 }
 0x267   : > { %v2059_v48 = vpop.f32.mrf.mxu0  ;;  %v2066_v49 = vpop.f32.mrf.mxu1  ;;  %1220 = vrot.lane.b32.xlu1 %v1215_v46, %s2379_s10 }
 0x268   : > { %1304 = vrot.lane.b32.xlu0 %v1298_v47, %s2381_s13 }
 0x26b   : > { %v1378_v50 = vpop.f32.mrf.mxu0  ;;  %v1461_v51 = vpop.f32.mrf.mxu1  ;;  %1224 = vrot.lane.b32.xlu1 %v1215_v46, %s2376_s17 }
 0x26c   : > { %1465 = vst.msk [vmem:[%s2693_s4 + $0x18] sm:$0x3] %vm484_vm4, %v1461_v51  ;;  %1383 = vrot.lane.b32.xlu0 %v1378_v50, %s2379_s10 }
 0x26d   : > { %v2073_v52 = vpop.f32.mrf.mxu0  ;;  %v2080_v53 = vpop.f32.mrf.mxu1 }
 0x26f   : > { %1467 = vrot.lane.b32.xlu1 %v1461_v51, %s2381_s13 }
 0x270   : > { %1387 = vrot.lane.b32.xlu0 %v1378_v50, %s2376_s17 }
 0x271   : > { %v1541_v58 = vpop.f32.mrf.mxu0  ;;  %v1624_v59 = vpop.f32.mrf.mxu1 }
 0x272   : > { %1628 = vst.msk [vmem:[%s2693_s4 + $0x1c] sm:$0x3] %vm484_vm4, %v1624_v59 }
 0x273   : > { %v2087_v60 = vpop.f32.mrf.mxu0  ;;  %v2094_v61 = vpop.f32.mrf.mxu1  ;;  %1546 = vrot.lane.b32.xlu1 %v1541_v58, %s2379_s10 }
 0x274   : > { %1630 = vrot.lane.b32.xlu0 %v1624_v59, %s2381_s13 }
 0x276   : > { %v1704_v62 = vpop.f32.mrf.mxu0 }
 0x277   : > { %1550 = vrot.lane.b32.xlu1 %v1541_v58, %s2376_s17 }
 0x278   : > { %v2101_v63 = vpop.f32.mrf.mxu0  ;;  %1709 = vrot.lane.b32.xlu0 %v1704_v62, %s2379_s10 }
 0x27c   : > { %1713 = vrot.lane.b32.xlu0 %v1704_v62, %s2376_s17 }
 0x2c1   : > { %v568_v0 = vpop.permute.xlu1 %567  ;;  %v654_v1 = vpop.permute.xlu0 %653 }
 0x2c2   : > { %571 = vst.msk [vmem:[%s2693_s4] sm:$0x3] %vm570_vm6, %v568_v0 }
 0x2c3   : > { %656 = vst.msk [vmem:[%s2693_s4 + $0x4] sm:$0x3] %vm490_vm5, %v654_v1 }
 0x2c5   : > { %v573_v2 = vpop.permute.xlu1 %572 }
 0x2c6   : > { %576 = vst.msk [vmem:[%s2693_s4] sm:$0x3] %vm575_vm7, %v573_v2  ;;  %v733_v3 = vpop.permute.xlu0 %732 }
 0x2c7   : > { %735 = vst.msk [vmem:[%s2693_s4 + $0x4] sm:$0x3] %vm570_vm6, %v733_v3 }
 0x2c9   : > { %v817_v4 = vpop.permute.xlu1 %816 }
 0x2ca   : > { %v737_v5 = vpop.permute.xlu0 %736  ;;  %819 = vst.msk [vmem:[%s2693_s4 + $0x8] sm:$0x3] %vm490_vm5, %v817_v4 }
 0x2cb   : > { %739 = vst.msk [vmem:[%s2693_s4 + $0x4] sm:$0x3] %vm575_vm7, %v737_v5 }
 0x2cd   : > { %v896_v6 = vpop.permute.xlu1 %895 }
 0x2ce   : > { %898 = vst.msk [vmem:[%s2693_s4 + $0x8] sm:$0x3] %vm570_vm6, %v896_v6  ;;  %v980_v7 = vpop.permute.xlu0 %979 }
 0x2cf   : > { %982 = vst.msk [vmem:[%s2693_s4 + $0xc] sm:$0x3] %vm490_vm5, %v980_v7 }
 0x2d1   : > { %v900_v8 = vpop.permute.xlu1 %899 }
 0x2d2   : > { %902 = vst.msk [vmem:[%s2693_s4 + $0x8] sm:$0x3] %vm575_vm7, %v900_v8  ;;  %v1059_v9 = vpop.permute.xlu0 %1058 }
 0x2d3   : > { %1061 = vst.msk [vmem:[%s2693_s4 + $0xc] sm:$0x3] %vm570_vm6, %v1059_v9 }
 0x2d5   : > { %v1142_v10 = vpop.permute.xlu1 %1141 }
 0x2d6   : > { %v1063_v11 = vpop.permute.xlu0 %1062  ;;  %1144 = vst.msk [vmem:[%s2693_s4 + $0x10] sm:$0x3] %vm490_vm5, %v1142_v10 }
 0x2d7   : > { %1065 = vst.msk [vmem:[%s2693_s4 + $0xc] sm:$0x3] %vm575_vm7, %v1063_v11 }
 0x2d9   : > { %v1221_v12 = vpop.permute.xlu1 %1220 }
 0x2da   : > { %1223 = vst.msk [vmem:[%s2693_s4 + $0x10] sm:$0x3] %vm570_vm6, %v1221_v12  ;;  %v1305_v13 = vpop.permute.xlu0 %1304 }
 0x2db   : > { %1307 = vst.msk [vmem:[%s2693_s4 + $0x14] sm:$0x3] %vm490_vm5, %v1305_v13 }
 0x2dd   : > { %v1225_v14 = vpop.permute.xlu1 %1224 }
 0x2de   : > { %1227 = vst.msk [vmem:[%s2693_s4 + $0x10] sm:$0x3] %vm575_vm7, %v1225_v14  ;;  %v1384_v15 = vpop.permute.xlu0 %1383 }
 0x2df   : > { %1386 = vst.msk [vmem:[%s2693_s4 + $0x14] sm:$0x3] %vm570_vm6, %v1384_v15 }
 0x2e1   : > { %v1468_v16 = vpop.permute.xlu1 %1467 }
 0x2e2   : > { %v1388_v17 = vpop.permute.xlu0 %1387  ;;  %1470 = vst.msk [vmem:[%s2693_s4 + $0x18] sm:$0x3] %vm490_vm5, %v1468_v16 }
 0x2e3   : > { %1390 = vst.msk [vmem:[%s2693_s4 + $0x14] sm:$0x3] %vm575_vm7, %v1388_v17 }
 0x2e5   : > { %v1547_v18 = vpop.permute.xlu1 %1546 }
 0x2e6   : > { %1549 = vst.msk [vmem:[%s2693_s4 + $0x18] sm:$0x3] %vm570_vm6, %v1547_v18  ;;  %v1631_v19 = vpop.permute.xlu0 %1630 }
 0x2e7   : > { %1633 = vst.msk [vmem:[%s2693_s4 + $0x1c] sm:$0x3] %vm490_vm5, %v1631_v19 }
 0x2e9   : > { %v1551_v20 = vpop.permute.xlu1 %1550 }
 0x2ea   : > { %1553 = vst.msk [vmem:[%s2693_s4 + $0x18] sm:$0x3] %vm575_vm7, %v1551_v20  ;;  %v1710_v21 = vpop.permute.xlu0 %1709 }
 0x2eb   : > { %1712 = vst.msk [vmem:[%s2693_s4 + $0x1c] sm:$0x3] %vm570_vm6, %v1710_v21 }
 0x2ee   : > { %v1714_v22 = vpop.permute.xlu0 %1713 }
 0x2ef   : > { %1716 = vst.msk [vmem:[%s2693_s4 + $0x1c] sm:$0x3] %vm575_vm7, %v1714_v22 }
 0x2f0   : > { %2291 = shalt.err (!%p2288_p6)
}
 0x2f1   : > { %s2292_s24 = scalar_lea.hbm %s2792_s29, 512  ;;  %s2296_s6 = scalar_lea.hbm %s2841_s5, 1024 }
 0x2f2   : > { %p2293_p9 = scmp.ne.s32.totalorder %s2792_s29, %s2292_s24  ;;  %p2297_p11 = scmp.lt.s32.totalorder %s2792_s29, %s2841_s5 }
 0x2f3   : > { %p2298_p3 = scmp.lt.s32.totalorder %s2296_s6, %s2292_s24 }
 0x2f4   : > { %p2294_p12 = pnand %p2293_p9, %p2497_p0 }
 0x2f5   : > { %p2299_p1 = por %p2298_p3, %p2297_p11 }
 0x2f6   : > { %p2295_p13 = pneg %p2294_p12 }
 0x2f8   : > { %p2300_p4 = pnand %p2299_p1, %p2295_p13 }
 0x2fa   : > { %2303 = shalt.err (!%p2300_p4)
}
 0x2fb   : > { %2110 = dma.vmem_to_hbm [thread:$0]  (%p2497_p0), %s1777_s9, 512, %s2792_s29, %s1760_s11  }
 0x2fc PF: > { %s1788_s25 = sand.u32 1, %s2346_s18   ;;  %p2859_p8 = scmp.ne.s32.totalorder %s2848_s27, 0 }
 0x2fd   : > { %s1789_s13 = scalar_lea.sflag [#allocation4], %s1788_s25 }
 0x2fe   : > { %p2124_p5 = pnand %p1899_p10, %p2859_p8 }
 0x300   : > { %p2125_p7 = pneg %p2124_p5 }
 0x302   : > { %2341 = dma.done.wait (%p2125_p7), %s1789_s13, 512  }
 0x303   : > { %2343 = vsyncadd (%p2125_p7), %s1789_s13, 4294966784  ;;  %s24_s23 = sadd.s32 1, %s2366_s23   ;;  %s2860_s30 = sld [smem:[#allocation13_spill]] }
 0x304   : > { %p21_p2 = scmp.ge.s32.totalorder %s24_s23, 4   ;;  %s2861_s20 = sld [smem:[#allocation15_spill]] }
 0x305   : > { %s2862_s15 = sld [smem:[#allocation14_spill]]  ;;  %s2863_s18 = smov %s2350_s19 }
 0x306   : > { %s2865_s21 = smov %s2362_s22 }
 0x307   :  { %23 = sbr.rel (!%p21_p2) target bundleno = 11 (0xb), region = 102 }
 0x309   : > { %s2864_s19 = smov %s2860_s30 }
 0x30b   : > { %s2866_s22 = smov %s2862_s15 }
 0x30c   :  { %1794 = vsyncpa [#allocation3], 1 }
 0x30d   :  { %1796 = vsyncpa [#allocation3 + $0x1], 1 }
 0x30e   :  { %1797 = vsyncpa [#allocation6], 1 }
 0x30f   :  { %1799 = vsyncpa [#allocation6 + $0x1], 1 }
 0x310   :  { %1800 = vsyncpa [#allocation4], 1 }
 0x311   :  { %1802 = vsyncpa [#allocation4 + $0x1], 1 }

</bundles_post_ra>
